<compile_context>
chip_gen: v7x
topology: tpu7x:2x2x1
jax: 0.10.0
libtpu: 0.0.40
codegen_flags: <defaults>
</compile_context>

<pallas_src>
import functools

import jax
import jax.numpy as jnp
import numpy as np
from jax.experimental import pallas as pl
from jax.experimental.pallas import tpu as pltpu

# ---------------- configuration (small, consistent with the module) ----------------
BATCH = 2          # batch_size
SEQ = 16           # sent_len
WORD_EMB = 32      # data.word_emb_dim  (pretrain='None', use_char=False, feature_num=0)
HIDDEN = 64        # data.HP_hidden_dim
CNN_LAYER = 2      # data.HP_cnn_layer
NUM_LABELS = 10    # data.label_alphabet_size
VOCAB = 50
BN_EPS = 1e-5
HP = 128           # lane-padded hidden width (tap blocks are full 128-lane tiles)
LANE_PAD = 128     # lane-dense output width (>= NUM_LABELS)
ROW_TARGET = 1024  # target rows per grid tile when B*L grows (sentence-aligned)


def word_sequence_kernel(rep_ref, w1_ref, convw_ref, vecs_ref, w2_ref, out_ref,
                         *, seq_len, apply_bn):
    """One sentence-aligned row tile per grid step.

    rep_ref:   (ROWS, D)               f32   word_represent rows (ROWS % seq_len == 0)
    w1_ref:    (D, HP)                 bf16  word2cnn weight, lane-padded
    convw_ref: (CNN_LAYER, HP, 3*HP)   bf16  per-layer fused conv taps [left | mid | right],
                                             each tap padded to a full 128-lane block
    vecs_ref:  (2+3*CNN_LAYER, HP)     f32   packed small vectors:
                                             row 0 = b1, rows 1..L = convb,
                                             rows 1+L..2L = bn_scale, 1+2L..3L = bn_shift,
                                             row 1+3L = b2
    w2_ref:    (HP, LANE_PAD)          bf16  hidden2tag weight, zero-padded beyond NUM_LABELS
    out_ref:   (ROWS, LANE_PAD)        f32
    """
    n_rows = rep_ref.shape[0]
    n_layers = convw_ref.shape[0]
    hp = w1_ref.shape[1]

    # Sentence-boundary masks built in-kernel (row tiles are sentence-aligned, so the
    # tile-local position modulo seq_len is exact regardless of which grid step this is).
    pos = jax.lax.broadcasted_iota(jnp.int32, (n_rows, hp), 0) % seq_len
    not_first = (pos != 0).astype(jnp.float32)             # 0.0 on first row of each sentence
    not_last = (pos != seq_len - 1).astype(jnp.float32)    # 0.0 on last  row of each sentence

    vecs = vecs_ref[...]
    b1 = vecs[0:1, :]

    # word2cnn Linear + tanh (bf16 operands, f32 accumulation on the MXU)
    h = jnp.tanh(
        jnp.dot(rep_ref[...].astype(jnp.bfloat16), w1_ref[...],
                preferred_element_type=jnp.float32) + b1)                  # (ROWS, HP)

    for l in range(n_layers):
        # One fused matmul covering all three conv taps: P = h @ [W_left | W_mid | W_right].
        p = jnp.dot(h.astype(jnp.bfloat16), convw_ref[l],
                    preferred_element_type=jnp.float32)                    # (ROWS, 3*HP)
        # Tap slices are full 128-lane tiles -> free views; rolls are sublane XLU work.
        left = pltpu.roll(p[:, :hp], shift=1, axis=0) * not_first              # h[t-1] tap
        mid = p[:, hp:2 * hp]                                                   # h[t]   tap
        right = pltpu.roll(p[:, 2 * hp:], shift=n_rows - 1, axis=0) * not_last  # h[t+1] tap
        y = jnp.maximum(left + mid + right + vecs[1 + l:2 + l, :], 0.0)     # Conv1d + ReLU
        # Dropout: eval mode -> identity
        if apply_bn:                                                        # BatchNorm1d (eval)
            y = (y * vecs[1 + n_layers + l:2 + n_layers + l, :]
                 + vecs[1 + 2 * n_layers + l:2 + 2 * n_layers + l, :])
        h = y

    # hidden2tag Linear (lane-padded to LANE_PAD output columns -> dense stores)
    out_ref[...] = (jnp.dot(h.astype(jnp.bfloat16), w2_ref[...],
                            preferred_element_type=jnp.float32)
                    + vecs[1 + 3 * n_layers:2 + 3 * n_layers, :])


def _row_tile(n_rows, seq_len, target=ROW_TARGET):
    """Largest sentence-aligned row tile <= target that divides n_rows."""
    sents = n_rows // seq_len
    per_tile = max(1, min(sents, max(1, target // seq_len)))
    while sents % per_tile != 0:
        per_tile -= 1
    return per_tile * seq_len


@jax.jit
def word_sequence_cnn(word_represent, packed):
    """word_represent: (B, L, D) f32; packed: one-time prepacked kernel weights."""
    B, L, D = word_represent.shape
    apply_bn = B > 1                      # trace-time flag, mirrors PyTorch's batch_size > 1 check
    BL = B * L
    rep_flat = word_represent.reshape(BL, D)

    row_tile = _row_tile(BL, L)
    grid = (BL // row_tile,)

    kernel = functools.partial(word_sequence_kernel, seq_len=L, apply_bn=apply_bn)

    out = pl.pallas_call(
        kernel,
        out_shape=jax.ShapeDtypeStruct((BL, LANE_PAD), jnp.float32),
        grid_spec=pltpu.PrefetchScalarGridSpec(
            num_scalar_prefetch=0,
            grid=grid,
            in_specs=[
                pl.BlockSpec((row_tile, D), lambda i: (i, 0)),
                pl.BlockSpec((D, HP), lambda i: (0, 0)),
                pl.BlockSpec((CNN_LAYER, HP, 3 * HP), lambda i: (0, 0, 0)),
                pl.BlockSpec((2 + 3 * CNN_LAYER, LANE_PAD), lambda i: (0, 0)),
                pl.BlockSpec((HP, LANE_PAD), lambda i: (0, 0)),
            ],
            out_specs=pl.BlockSpec((row_tile, LANE_PAD), lambda i: (i, 0)),
        ),
        compiler_params=pltpu.CompilerParams(
            dimension_semantics=("parallel",)),
    )(rep_flat, packed["w1"], packed["convw"], packed["vecs"], packed["w2"])

    # TODO(synk): drop this slice if downstream consumers can read the lane-padded (B,L,128) slab.
    return out[:, :NUM_LABELS].reshape(B, L, NUM_LABELS)


def prepack_for_kernel(params):
    """One-time (per parameter set) weight preprocessing: lane-pad to 128, fuse conv taps,
    bf16-cast matmul operands, pack all small vectors into a single (8,128) f32 block."""
    H, D, NL = HIDDEN, WORD_EMB, NUM_LABELS

    w1 = jnp.zeros((D, HP), jnp.float32).at[:, :H].set(params["w1"]).astype(jnp.bfloat16)

    convw = jnp.zeros((CNN_LAYER, HP, 3 * HP), jnp.float32)
    for k in range(3):  # taps: 0=left(h[t-1]), 1=mid(h[t]), 2=right(h[t+1])
        convw = convw.at[:, :H, k * HP:k * HP + H].set(params["convw"][:, k])
    convw = convw.astype(jnp.bfloat16)

    w2 = jnp.zeros((HP, LANE_PAD), jnp.float32).at[:H, :NL].set(params["w2"]).astype(jnp.bfloat16)

    vecs = jnp.zeros((2 + 3 * CNN_LAYER, LANE_PAD), jnp.float32)
    vecs = vecs.at[0, :H].set(params["b1"][0])
    for l in range(CNN_LAYER):
        vecs = vecs.at[1 + l, :H].set(params["convb"][l, 0])
        vecs = vecs.at[1 + CNN_LAYER + l, :H].set(params["bn_scale"][l, 0])
        vecs = vecs.at[1 + 2 * CNN_LAYER + l, :H].set(params["bn_shift"][l, 0])
    vecs = vecs.at[1 + 3 * CNN_LAYER, :NL].set(params["b2"][0])

    return {"w1": w1, "convw": convw, "w2": w2, "vecs": vecs}


def reference(word_represent, params):
    """Plain-JAX (f32) reference of the same forward path (for correctness check)."""
    B = word_represent.shape[0]
    h = jnp.tanh(word_represent @ params["w1"] + params["b1"][0])
    for l in range(CNN_LAYER):
        h_prev = jnp.pad(h, ((0, 0), (1, 0), (0, 0)))[:, :-1, :]
        h_next = jnp.pad(h, ((0, 0), (0, 1), (0, 0)))[:, 1:, :]
        y = (h_prev @ params["convw"][l, 0]
             + h @ params["convw"][l, 1]
             + h_next @ params["convw"][l, 2]
             + params["convb"][l, 0])
        y = jnp.maximum(y, 0.0)
        if B > 1:
            y = y * params["bn_scale"][l, 0] + params["bn_shift"][l, 0]
        h = y
    return h @ params["w2"] + params["b2"][0]


def init_params(key):
    ks = jax.random.split(key, 8)
    scale = 0.1
    w1 = scale * jax.random.normal(ks[0], (WORD_EMB, HIDDEN), jnp.float32)
    b1 = scale * jax.random.normal(ks[1], (1, HIDDEN), jnp.float32)
    # PyTorch Conv1d weight is (out_ch, in_ch, 3); here stored channels-last per tap:
    # convw[l, k][in, out] == torch_conv_w[:, :, k].T
    convw = scale * jax.random.normal(ks[2], (CNN_LAYER, 3, HIDDEN, HIDDEN), jnp.float32)
    convb = scale * jax.random.normal(ks[3], (CNN_LAYER, 1, HIDDEN), jnp.float32)
    # BatchNorm1d default init: gamma=1, beta=0, running_mean=0, running_var=1 (eval mode)
    gamma = jnp.ones((CNN_LAYER, 1, HIDDEN), jnp.float32)
    beta = jnp.zeros((CNN_LAYER, 1, HIDDEN), jnp.float32)
    run_mean = jnp.zeros((CNN_LAYER, 1, HIDDEN), jnp.float32)
    run_var = jnp.ones((CNN_LAYER, 1, HIDDEN), jnp.float32)
    bn_scale = gamma / jnp.sqrt(run_var + BN_EPS)
    bn_shift = beta - run_mean * bn_scale
    w2 = scale * jax.random.normal(ks[4], (HIDDEN, NUM_LABELS), jnp.float32)
    b2 = scale * jax.random.normal(ks[5], (1, NUM_LABELS), jnp.float32)
    word_emb_table = scale * jax.random.normal(ks[6], (VOCAB, WORD_EMB), jnp.float32)
    return {
        "w1": w1, "b1": b1, "convw": convw, "convb": convb,
        "bn_scale": bn_scale, "bn_shift": bn_shift, "w2": w2, "b2": b2,
        "word_emb_table": word_emb_table,
    }


if __name__ == "__main__":
    key = jax.random.PRNGKey(0)
    params = init_params(key)
    packed = prepack_for_kernel(params)   # one-time weight prep (NOT per forward pass)

    # word_inputs: (batch_size, sent_len) int token ids
    word_inputs = jax.random.randint(jax.random.PRNGKey(1), (BATCH, SEQ), 0, VOCAB)
    # Simplified WordRep: word-embedding lookup (glue, plain JAX); dropout in eval = identity.
    word_represent = params["word_emb_table"][word_inputs]          # (B, L, WORD_EMB)

    out = word_sequence_cnn(word_represent, packed)
    out = jax.block_until_ready(out)

    ref = jax.block_until_ready(reference(word_represent, params))
    assert out.shape == (BATCH, SEQ, NUM_LABELS)
    # Looser tolerance than pure-f32: kernel matmul operands are bf16 (f32 accumulation).
    np.testing.assert_allclose(np.asarray(out), np.asarray(ref), rtol=2e-2, atol=1e-2)

    print("KERNEL_OK")
</pallas_src>

<mosaic_0001>
module attributes {stable_mosaic.version = 11 : i64} {
  func.func @word_sequence_kernel(%arg0: i32, %arg1: memref<32x32xf32, #tpu.memory_space<vmem>>, %arg2: memref<32x128xbf16, #tpu.memory_space<vmem>>, %arg3: memref<2x128x384xbf16, #tpu.memory_space<vmem>>, %arg4: memref<8x128xf32, #tpu.memory_space<vmem>>, %arg5: memref<128x128xbf16, #tpu.memory_space<vmem>>, %arg6: memref<32x128xf32, #tpu.memory_space<vmem>>) attributes {dimension_semantics = [#tpu.dimension_semantics<parallel>], iteration_bounds = array<i64: 1>, scalar_prefetch = 0 : i64, scratch_operands = 0 : i64, tpu.core_type = #tpu.core_type<tc>, window_params = [{transform_indices = @transform_0, window_bounds = array<i64: 32, 32>}, {pipeline_mode = #tpu.pipeline_mode<synchronous>, transform_indices = @transform_1, window_bounds = array<i64: 32, 128>}, {pipeline_mode = #tpu.pipeline_mode<synchronous>, transform_indices = @transform_2, window_bounds = array<i64: 2, 128, 384>}, {pipeline_mode = #tpu.pipeline_mode<synchronous>, transform_indices = @transform_3, window_bounds = array<i64: 8, 128>}, {pipeline_mode = #tpu.pipeline_mode<synchronous>, transform_indices = @transform_4, window_bounds = array<i64: 128, 128>}, {transform_indices = @transform_5, window_bounds = array<i64: 32, 128>}]} {
    %0 = tpu.iota {dimensions = array<i32: 0>} : vector<32x128xi32>
    %c16_i32 = arith.constant 16 : i32
    %c0_i32 = arith.constant 0 : i32
    %1 = arith.cmpi eq, %c16_i32, %c0_i32 : i32
    %c1_i32 = arith.constant 1 : i32
    %2 = arith.select %1, %c1_i32, %c16_i32 : i32
    %3 = vector.broadcast %2 : i32 to vector<32x128xi32>
    %4 = arith.remsi %0, %3 : vector<32x128xi32>
    %c0_i32_0 = arith.constant 0 : i32
    %5 = vector.broadcast %c0_i32_0 : i32 to vector<32x128xi32>
    %6 = arith.cmpi ne, %4, %5 : vector<32x128xi32>
    %c0_i32_1 = arith.constant 0 : i32
    %7 = vector.broadcast %c0_i32_1 : i32 to vector<32x128xi32>
    %8 = arith.cmpi slt, %4, %7 : vector<32x128xi32>
    %c0_i32_2 = arith.constant 0 : i32
    %9 = arith.cmpi slt, %2, %c0_i32_2 : i32
    %10 = vector.broadcast %9 : i1 to vector<32x128xi1>
    %11 = vector.broadcast %10 : vector<32x128xi1> to vector<32x128xi1>
    %12 = arith.xori %8, %11 : vector<32x128xi1>
    %13 = arith.andi %12, %6 : vector<32x128xi1>
    %14 = vector.broadcast %2 : i32 to vector<32x128xi32>
    %15 = arith.addi %4, %14 : vector<32x128xi32>
    %16 = arith.select %13, %15, %4 : vector<32x128xi1>, vector<32x128xi32>
    %c0_i32_3 = arith.constant 0 : i32
    %17 = vector.broadcast %c0_i32_3 : i32 to vector<32x128xi32>
    %18 = arith.cmpi ne, %16, %17 : vector<32x128xi32>
    %19 = arith.extui %18 : vector<32x128xi1> to vector<32x128xi32>
    %20 = arith.sitofp %19 : vector<32x128xi32> to vector<32x128xf32>
    %c15_i32 = arith.constant 15 : i32
    %21 = vector.broadcast %c15_i32 : i32 to vector<32x128xi32>
    %22 = arith.cmpi ne, %16, %21 : vector<32x128xi32>
    %23 = arith.extui %22 : vector<32x128xi1> to vector<32x128xi32>
    %24 = arith.sitofp %23 : vector<32x128xi32> to vector<32x128xf32>
    %c0 = arith.constant 0 : index
    %c0_4 = arith.constant 0 : index
    %25 = vector.load %arg4[%c0, %c0_4] : memref<8x128xf32, #tpu.memory_space<vmem>>, vector<8x128xf32>
    %26 = vector.extract_strided_slice %25 {offsets = [0, 0], sizes = [1, 128], strides = [1, 1]} : vector<8x128xf32> to vector<1x128xf32>
    %c0_5 = arith.constant 0 : index
    %c0_6 = arith.constant 0 : index
    %27 = vector.load %arg1[%c0_5, %c0_6] : memref<32x32xf32, #tpu.memory_space<vmem>>, vector<32x32xf32>
    %28 = arith.truncf %27 : vector<32x32xf32> to vector<32x32xbf16>
    %c0_7 = arith.constant 0 : index
    %c0_8 = arith.constant 0 : index
    %29 = vector.load %arg2[%c0_7, %c0_8] : memref<32x128xbf16, #tpu.memory_space<vmem>>, vector<32x128xbf16>
    %cst = arith.constant dense<0.000000e+00> : vector<32x128xf32>
    %30 = tpu.matmul %28, %29, %cst {dimension_numbers = #tpu.dot_dimension_numbers<[1], [0], [0], [1], [0, 0, 1, 1], [], []>} : vector<32x32xbf16>, vector<32x128xbf16>, vector<32x128xf32> -> vector<32x128xf32>
    %31 = vector.broadcast %26 : vector<1x128xf32> to vector<32x128xf32>
    %32 = arith.addf %30, %31 : vector<32x128xf32>
    %33 = math.tanh %32 : vector<32x128xf32>
    %34 = arith.truncf %33 : vector<32x128xf32> to vector<32x128xbf16>
    %c0_9 = arith.constant 0 : index
    %c0_10 = arith.constant 0 : index
    %c0_11 = arith.constant 0 : index
    %35 = vector.load %arg3[%c0_9, %c0_10, %c0_11] : memref<2x128x384xbf16, #tpu.memory_space<vmem>>, vector<1x128x384xbf16>
    %36 = vector.shape_cast %35 : vector<1x128x384xbf16> to vector<128x384xbf16>
    %cst_12 = arith.constant dense<0.000000e+00> : vector<32x384xf32>
    %37 = tpu.matmul %34, %36, %cst_12 {dimension_numbers = #tpu.dot_dimension_numbers<[1], [0], [0], [1], [0, 0, 1, 1], [], []>} : vector<32x128xbf16>, vector<128x384xbf16>, vector<32x384xf32> -> vector<32x384xf32>
    %38 = vector.extract_strided_slice %37 {offsets = [0, 0], sizes = [32, 128], strides = [1, 1]} : vector<32x384xf32> to vector<32x128xf32>
    %c1_i32_13 = arith.constant 1 : i32
    %39 = tpu.dynamic_rotate %38 by %c1_i32_13 dim 0 : vector<32x128xf32>, i32 -> vector<32x128xf32>
    %40 = arith.mulf %39, %20 : vector<32x128xf32>
    %41 = vector.extract_strided_slice %37 {offsets = [0, 128], sizes = [32, 128], strides = [1, 1]} : vector<32x384xf32> to vector<32x128xf32>
    %42 = vector.extract_strided_slice %37 {offsets = [0, 256], sizes = [32, 128], strides = [1, 1]} : vector<32x384xf32> to vector<32x128xf32>
    %c31_i32 = arith.constant 31 : i32
    %43 = tpu.dynamic_rotate %42 by %c31_i32 dim 0 : vector<32x128xf32>, i32 -> vector<32x128xf32>
    %44 = arith.mulf %43, %24 : vector<32x128xf32>
    %45 = arith.addf %40, %41 : vector<32x128xf32>
    %46 = arith.addf %45, %44 : vector<32x128xf32>
    %47 = vector.extract_strided_slice %25 {offsets = [1, 0], sizes = [1, 128], strides = [1, 1]} : vector<8x128xf32> to vector<1x128xf32>
    %48 = vector.broadcast %47 : vector<1x128xf32> to vector<32x128xf32>
    %49 = arith.addf %46, %48 : vector<32x128xf32>
    %cst_14 = arith.constant 0.000000e+00 : f32
    %50 = vector.broadcast %cst_14 : f32 to vector<32x128xf32>
    %51 = arith.maximumf %49, %50 : vector<32x128xf32>
    %52 = vector.extract_strided_slice %25 {offsets = [3, 0], sizes = [1, 128], strides = [1, 1]} : vector<8x128xf32> to vector<1x128xf32>
    %53 = vector.broadcast %52 : vector<1x128xf32> to vector<32x128xf32>
    %54 = arith.mulf %51, %53 : vector<32x128xf32>
    %55 = vector.extract_strided_slice %25 {offsets = [5, 0], sizes = [1, 128], strides = [1, 1]} : vector<8x128xf32> to vector<1x128xf32>
    %56 = vector.broadcast %55 : vector<1x128xf32> to vector<32x128xf32>
    %57 = arith.addf %54, %56 : vector<32x128xf32>
    %58 = arith.truncf %57 : vector<32x128xf32> to vector<32x128xbf16>
    %c1 = arith.constant 1 : index
    %c0_15 = arith.constant 0 : index
    %c0_16 = arith.constant 0 : index
    %59 = vector.load %arg3[%c1, %c0_15, %c0_16] : memref<2x128x384xbf16, #tpu.memory_space<vmem>>, vector<1x128x384xbf16>
    %60 = vector.shape_cast %59 : vector<1x128x384xbf16> to vector<128x384xbf16>
    %cst_17 = arith.constant dense<0.000000e+00> : vector<32x384xf32>
    %61 = tpu.matmul %58, %60, %cst_17 {dimension_numbers = #tpu.dot_dimension_numbers<[1], [0], [0], [1], [0, 0, 1, 1], [], []>} : vector<32x128xbf16>, vector<128x384xbf16>, vector<32x384xf32> -> vector<32x384xf32>
    %62 = vector.extract_strided_slice %61 {offsets = [0, 0], sizes = [32, 128], strides = [1, 1]} : vector<32x384xf32> to vector<32x128xf32>
    %c1_i32_18 = arith.constant 1 : i32
    %63 = tpu.dynamic_rotate %62 by %c1_i32_18 dim 0 : vector<32x128xf32>, i32 -> vector<32x128xf32>
    %64 = arith.mulf %63, %20 : vector<32x128xf32>
    %65 = vector.extract_strided_slice %61 {offsets = [0, 128], sizes = [32, 128], strides = [1, 1]} : vector<32x384xf32> to vector<32x128xf32>
    %66 = vector.extract_strided_slice %61 {offsets = [0, 256], sizes = [32, 128], strides = [1, 1]} : vector<32x384xf32> to vector<32x128xf32>
    %c31_i32_19 = arith.constant 31 : i32
    %67 = tpu.dynamic_rotate %66 by %c31_i32_19 dim 0 : vector<32x128xf32>, i32 -> vector<32x128xf32>
    %68 = arith.mulf %67, %24 : vector<32x128xf32>
    %69 = arith.addf %64, %65 : vector<32x128xf32>
    %70 = arith.addf %69, %68 : vector<32x128xf32>
    %71 = vector.extract_strided_slice %25 {offsets = [2, 0], sizes = [1, 128], strides = [1, 1]} : vector<8x128xf32> to vector<1x128xf32>
    %72 = vector.broadcast %71 : vector<1x128xf32> to vector<32x128xf32>
    %73 = arith.addf %70, %72 : vector<32x128xf32>
    %cst_20 = arith.constant 0.000000e+00 : f32
    %74 = vector.broadcast %cst_20 : f32 to vector<32x128xf32>
    %75 = arith.maximumf %73, %74 : vector<32x128xf32>
    %76 = vector.extract_strided_slice %25 {offsets = [4, 0], sizes = [1, 128], strides = [1, 1]} : vector<8x128xf32> to vector<1x128xf32>
    %77 = vector.broadcast %76 : vector<1x128xf32> to vector<32x128xf32>
    %78 = arith.mulf %75, %77 : vector<32x128xf32>
    %79 = vector.extract_strided_slice %25 {offsets = [6, 0], sizes = [1, 128], strides = [1, 1]} : vector<8x128xf32> to vector<1x128xf32>
    %80 = vector.broadcast %79 : vector<1x128xf32> to vector<32x128xf32>
    %81 = arith.addf %78, %80 : vector<32x128xf32>
    %82 = arith.truncf %81 : vector<32x128xf32> to vector<32x128xbf16>
    %c0_21 = arith.constant 0 : index
    %c0_22 = arith.constant 0 : index
    %83 = vector.load %arg5[%c0_21, %c0_22] : memref<128x128xbf16, #tpu.memory_space<vmem>>, vector<128x128xbf16>
    %cst_23 = arith.constant dense<0.000000e+00> : vector<32x128xf32>
    %84 = tpu.matmul %82, %83, %cst_23 {dimension_numbers = #tpu.dot_dimension_numbers<[1], [0], [0], [1], [0, 0, 1, 1], [], []>} : vector<32x128xbf16>, vector<128x128xbf16>, vector<32x128xf32> -> vector<32x128xf32>
    %85 = vector.extract_strided_slice %25 {offsets = [7, 0], sizes = [1, 128], strides = [1, 1]} : vector<8x128xf32> to vector<1x128xf32>
    %86 = vector.broadcast %85 : vector<1x128xf32> to vector<32x128xf32>
    %87 = arith.addf %84, %86 : vector<32x128xf32>
    %c0_24 = arith.constant 0 : index
    %c0_25 = arith.constant 0 : index
    %88 = vector.load %arg6[%c0_24, %c0_25] : memref<32x128xf32, #tpu.memory_space<vmem>>, vector<32x128xf32>
    tpu.vector_store %arg6[%c0_24, %c0_25], %87 {strides = array<i32>} : memref<32x128xf32, #tpu.memory_space<vmem>>, vector<32x128xf32>,
    return
  }
  func.func @transform_0(%arg0: i32) -> (i32, i32) {
    %c0_i32 = arith.constant 0 : i32
    %c0_i32_0 = arith.constant 0 : i32
    return %arg0, %c0_i32 : i32, i32
  }
  func.func @transform_1(%arg0: i32) -> (i32, i32) {
    %c0_i32 = arith.constant 0 : i32
    %c0_i32_0 = arith.constant 0 : i32
    %c0_i32_1 = arith.constant 0 : i32
    return %c0_i32, %c0_i32_0 : i32, i32
  }
  func.func @transform_2(%arg0: i32) -> (i32, i32, i32) {
    %c0_i32 = arith.constant 0 : i32
    %c0_i32_0 = arith.constant 0 : i32
    %c0_i32_1 = arith.constant 0 : i32
    %c0_i32_2 = arith.constant 0 : i32
    return %c0_i32, %c0_i32_0, %c0_i32_1 : i32, i32, i32
  }
  func.func @transform_3(%arg0: i32) -> (i32, i32) {
    %c0_i32 = arith.constant 0 : i32
    %c0_i32_0 = arith.constant 0 : i32
    %c0_i32_1 = arith.constant 0 : i32
    return %c0_i32, %c0_i32_0 : i32, i32
  }
  func.func @transform_4(%arg0: i32) -> (i32, i32) {
    %c0_i32 = arith.constant 0 : i32
    %c0_i32_0 = arith.constant 0 : i32
    %c0_i32_1 = arith.constant 0 : i32
    return %c0_i32, %c0_i32_0 : i32, i32
  }
  func.func @transform_5(%arg0: i32) -> (i32, i32) {
    %c0_i32 = arith.constant 0 : i32
    %c0_i32_0 = arith.constant 0 : i32
    return %arg0, %c0_i32 : i32, i32
  }
}

</mosaic_0001>

<bundles_post_ra>
// kernel: word_sequence_cnn.1
= control target key start
LH: loop header
LB: loop body
LE: loop exit
PB: predicated region body
PF: predicated region fallthrough
CT: control target
= control target key end

     0   :  { %10 = vsyncpa [#allocation3], 0  ;;  %s1570_s0 = inlined_call_operand.hbm [shape: f32[32,32], index: 0, kind: input, shape index: {}]   ;;  %s1571_s1 = inlined_call_operand.hbm [shape: bf16[32,128], index: 1, kind: input, shape index: {}]   ;;  %s1572_s2 = inlined_call_operand.hbm [shape: bf16[2,128,384], index: 2, kind: input, shape index: {}]   ;;  %s1573_s3 = inlined_call_operand.vmem [shape: f32[8,128], index: 3, kind: input, shape index: {}]   ;;  %s1574_s4 = inlined_call_operand.hbm [shape: bf16[128,128], index: 4, kind: input, shape index: {}]   ;;  %s1575_s5 = inlined_call_operand.vmem [shape: f32[32,128], index: 5, kind: output, shape index: {}]  }
   0x1   :  { %11 = vsyncpa [#allocation5], 0 }
   0x2   :  { %12 = vsyncpa [#allocation8], 0  ;;  %s1375_s18 = smov [#allocation4]   ;;  %s1281_s22 = scalar_lea.hbm %s1571_s1, 256 }
   0x3   :  { %s30_s19 = sshll.u32 %s1375_s18, 4  ;;  %p1282_p0 = scmp.ne.s32.totalorder %s1571_s1, %s1281_s22  ;;  %s31_s19 = int_to_ptr.vmem [resolvable:$true] %s30_s19 }
   0x4   :  { %p1285_p1 = scmp.lt.u32.totalorder %s1281_s22, %s1571_s1 }
   0x6   :  { %p1287_p2 = pnand %p1285_p1, %p1282_p0 }
   0x8   :  { %1290 = shalt.err (!%p1287_p2)
}
   0x9   :  { %s1291_s27 = scalar_lea.vmem %s31_s19, 256  ;;  %p1296_p4 = scmp.lt.s32.totalorder %s31_s19, %s31_s19 }
   0xa   :  { %p1292_p3 = scmp.ne.s32.totalorder %s31_s19, %s1291_s27  ;;  %p1297_p5 = scmp.lt.s32.totalorder %s1291_s27, %s1291_s27 }
   0xc   :  { %p1298_p6 = por %p1297_p5, %p1296_p4 }
   0xe   :  { %p1299_p7 = pnand %p1298_p6, %p1292_p3 }
  0x10   :  { %1302 = shalt.err (!%p1299_p7)
}
  0x11   :  { %s1376_s28 = smov 64   ;;  %s1377_s29 = smov 4  }
  0x12   :  { %36 = dma.hbm_to_vmem [thread:$0]  %s1571_s1, 256, %s31_s19, [#allocation5], %s1376_s28, %s1376_s28, %s1377_s29  }
  0x13   :  { %s1378_s7 = smov [#allocation2]   ;;  %s1303_s11 = scalar_lea.hbm %s1570_s0, 512 }
  0x14   :  { %s18_s8 = sshll.u32 %s1378_s7, 4  ;;  %p1304_p8 = scmp.ne.s32.totalorder %s1570_s0, %s1303_s11  ;;  %s19_s8 = int_to_ptr.vmem [resolvable:$true] %s18_s8 }
  0x15   :  { %p1307_p9 = scmp.lt.u32.totalorder %s1303_s11, %s1570_s0 }
  0x17   :  { %p1309_p10 = pnand %p1307_p9, %p1304_p8 }
  0x19   :  { %1312 = shalt.err (!%p1309_p10)
}
  0x1a   :  { %s1313_s16 = scalar_lea.vmem %s19_s8, 512  ;;  %p1318_p12 = scmp.lt.s32.totalorder %s19_s8, %s19_s8 }
  0x1b   :  { %p1314_p11 = scmp.ne.s32.totalorder %s19_s8, %s1313_s16  ;;  %p1319_p13 = scmp.lt.s32.totalorder %s1313_s16, %s1313_s16 }
  0x1d   :  { %p1320_p0 = por %p1319_p13, %p1318_p12 }
  0x1f   :  { %p1321_p1 = pnand %p1320_p0, %p1314_p11 }
  0x21   :  { %1324 = shalt.err (!%p1321_p1)
}
  0x22   :  { %s1379_s1 = smov 128   ;;  %s1380_s17 = smov 8  }
  0x23   :  { %24 = dma.hbm_to_vmem [thread:$0]  %s1570_s0, 512, %s19_s8, [#allocation3], %s1379_s1, %s1379_s1, %s1380_s17  }
  0x24   :  { %s1381_s20 = smov [#allocation6]   ;;  %s1325_s24 = scalar_lea.hbm %s1572_s2, 6144 }
  0x25   :  { %s42_s21 = sshll.u32 %s1381_s20, 4  ;;  %p1326_p2 = scmp.ne.s32.totalorder %s1572_s2, %s1325_s24  ;;  %s43_s21 = int_to_ptr.vmem [resolvable:$true] %s42_s21 }
  0x26   :  { %p1329_p3 = scmp.lt.u32.totalorder %s1325_s24, %s1572_s2 }
  0x28   :  { %p1331_p4 = pnand %p1329_p3, %p1326_p2 }
  0x2a   :  { %1334 = shalt.err (!%p1331_p4)
}
  0x2b   :  { %s1335_s6 = scalar_lea.vmem %s43_s21, 6144  ;;  %p1340_p6 = scmp.lt.s32.totalorder %s43_s21, %s43_s21 }
  0x2c   :  { %p1336_p5 = scmp.ne.s32.totalorder %s43_s21, %s1335_s6  ;;  %p1341_p7 = scmp.lt.s32.totalorder %s1335_s6, %s1335_s6 }
  0x2e   :  { %p1342_p8 = por %p1341_p7, %p1340_p6 }
  0x30   :  { %p1343_p9 = pnand %p1342_p8, %p1336_p5 }
  0x32   :  { %1346 = shalt.err (!%p1343_p9)
}
  0x33   :  { %s1382_s0 = smov 192   ;;  %s1383_s7 = smov 12  }
  0x34   :  { %48 = dma.hbm_to_vmem [thread:$0]  %s1572_s2, 6144, %s43_s21, [#allocation5], %s1382_s0, %s1382_s0, %s1383_s7  }
  0x35   :  { %s1384_s10 = smov [#allocation7]   ;;  %s1347_s14 = scalar_lea.hbm %s1574_s4, 1024 }
  0x36   :  { %s56_s11 = sshll.u32 %s1384_s10, 4  ;;  %p1348_p10 = scmp.ne.s32.totalorder %s1574_s4, %s1347_s14  ;;  %s57_s11 = int_to_ptr.vmem [resolvable:$true] %s56_s11 }
  0x37   :  { %p1351_p11 = scmp.lt.u32.totalorder %s1347_s14, %s1574_s4 }
  0x39   :  { %p1353_p12 = pnand %p1351_p11, %p1348_p10 }
  0x3b   :  { %1356 = shalt.err (!%p1353_p12)
}
  0x3c   :  { %s1357_s18 = scalar_lea.vmem %s57_s11, 1024  ;;  %p1362_p0 = scmp.lt.s32.totalorder %s57_s11, %s57_s11 }
  0x3d   :  { %p1358_p13 = scmp.ne.s32.totalorder %s57_s11, %s1357_s18  ;;  %p1363_p1 = scmp.lt.s32.totalorder %s1357_s18, %s1357_s18 }
  0x3f   :  { %p1364_p2 = por %p1363_p1, %p1362_p0 }
  0x41   :  { %p1365_p3 = pnand %p1364_p2, %p1358_p13 }
  0x43   :  { %1368 = shalt.err (!%p1365_p3)
}
  0x44   :  { %62 = dma.hbm_to_vmem [thread:$0]  %s1574_s4, 1024, %s57_s11, [#allocation8], %s1376_s28, %s1376_s28, %s1377_s29  }
  0x45   :  { %1369 = dma.done.wait [#allocation3], 512  }
  0x46   :  { %1370 = vsyncadd [#allocation3], 4294966784 }
  0x47   :  { %1371 = dma.done.wait [#allocation5], 6400  }
  0x48   :  { %1372 = vsyncadd [#allocation5], 4294960896 }
  0x49   :  { %1373 = dma.done.wait [#allocation8], 1024  }
  0x4a   :  { %1374 = vsyncadd [#allocation8], 4294966272  ;;  %v1199_v0 = vld [vmem:[#allocation4] sm:$0xff]   ;;  %v1200_v1 = vld [vmem:[#allocation4 + $0x8] sm:$0xff]   ;;  %vm180_vm0 = vcmask 261120   ;;  %v1385_v31 = vmov 0   ;;  %v76_v35 = vlaneseq }
  0x4b   :  { %1119 = vmatprep.subr.bf16.mxu0 %v1199_v0  ;;  %v154_v2 = vld [vmem:[#allocation2] sm:$0xff]  ;;  %v155_v3 = vld [vmem:[#allocation2 + $0x8] sm:$0xff]  ;;  %v156_v4 = vld [vmem:[#allocation2 + $0x10] sm:$0xff]  ;;  %434 = vmatprep.mubr.bf16.mxu1 %v1385_v31 }
  0x4c   :  { %1120 = vmatpush3.bf16.msra.mxu0 %v1199_v0  ;;  %v158_v5 = vpack.c.bf16 %v155_v3, %v154_v2  ;;  %v157_v6 = vld [vmem:[#allocation2 + $0x18] sm:$0xff]  ;;  %v1201_v7 = vld [vmem:[#allocation6 + $0x4] ss:$12 sps:$4 sm:$0xff]   ;;  %v1209_v14 = vld [vmem:[#allocation6 + $0x34] ss:$12 sps:$4 sm:$0xff]   ;;  %v1474_v36 = vshrl.u32 %v76_v35, 7 }
  0x4d   :  { %1121 = vmatprep.subr.bf16.mxu0 %v1200_v1  ;;  %v1203_v8 = vld [vmem:[#allocation6] ss:$12 sps:$4 sm:$0xff]   ;;  %v1204_v9 = vld [vmem:[#allocation6 + $0x8] ss:$12 sps:$4 sm:$0xff]   ;;  %v159_v10 = vpack.c.bf16 %v157_v6, %v156_v4  ;;  %402 = vmatprep.subr.bf16.mxu1 %v1201_v7  ;;  %v1207_v12 = vld [vmem:[#allocation6 + $0x18] ss:$12 sps:$4 sm:$0xff]  }
  0x4e   :  { %1123 = vmatprep.mubr.msk.bf16.mxu0 %vm180_vm0, %v158_v5  ;;  %v1205_v11 = vld [vmem:[#allocation6 + $0x1c] ss:$12 sps:$4 sm:$0xff]   ;;  %403 = vmatpush1.bf16.msra.mxu1 %v1203_v8  ;;  %v1208_v13 = vld [vmem:[#allocation6 + $0x20] ss:$12 sps:$4 sm:$0xff]   ;;  %v1212_v16 = vld [vmem:[#allocation6 + $0x38] ss:$12 sps:$4 sm:$0xff]  }
  0x4f   :  { %404 = vmatprep.subr.bf16.mxu1 %v1205_v11  ;;  %v1211_v15 = vld [vmem:[#allocation6 + $0x30] ss:$12 sps:$4 sm:$0xff]   ;;  %v1213_v17 = vld [vmem:[#allocation6 + $0x4c] ss:$12 sps:$4 sm:$0xff]   ;;  %v1215_v18 = vld [vmem:[#allocation6 + $0x48] ss:$12 sps:$4 sm:$0xff]  }
  0x50   :  { %1122 = vmatpush3.bf16.msra.mxu0 %v1200_v1  ;;  %v1216_v19 = vld [vmem:[#allocation6 + $0x50] ss:$12 sps:$4 sm:$0xff]   ;;  %v1219_v21 = vld [vmem:[#allocation6 + $0x60] ss:$12 sps:$4 sm:$0xff]   ;;  %v1220_v22 = vld [vmem:[#allocation6 + $0x68] ss:$12 sps:$4 sm:$0xff]  }
  0x51   :  { %1127 = vmatprep.subr.bf16.mxu0 %v1204_v9  ;;  %v1217_v20 = vld [vmem:[#allocation6 + $0x64] ss:$12 sps:$4 sm:$0xff]   ;;  %v1221_v23 = vld [vmem:[#allocation6 + $0x7c] ss:$12 sps:$4 sm:$0xff]   ;;  %v1224_v25 = vld [vmem:[#allocation6 + $0x80] ss:$12 sps:$4 sm:$0xff]  }
  0x52   :  { %405 = vmatpush1.bf16.msra.mxu1 %v1207_v12  ;;  %v1223_v24 = vld [vmem:[#allocation6 + $0x78] ss:$12 sps:$4 sm:$0xff]   ;;  %v1225_v26 = vld [vmem:[#allocation6 + $0x94] ss:$12 sps:$4 sm:$0xff]   ;;  %v1227_v28 = vld [vmem:[#allocation6 + $0x90] ss:$12 sps:$4 sm:$0xff]  }
  0x53   :  { %1124 = vmatmul.mubr.msk.bf16.vlgmr.msra.gmra.mrb[0].mxu0 %vm180_vm0, %v159_v10  ;;  %406 = vmatprep.subr.bf16.mxu1 %v1209_v14  ;;  %v1228_v27 = vld [vmem:[#allocation6 + $0x98] ss:$12 sps:$4 sm:$0xff]   ;;  %v1232_v30 = vld [vmem:[#allocation6 + $0xb0] ss:$12 sps:$4 sm:$0xff]   ;;  %v1231_v32 = vld [vmem:[#allocation6 + $0xa8] ss:$12 sps:$4 sm:$0xff]  }
  0x54   :  { %1128 = vmatpush3.bf16.msra.mxu0 %v1204_v9  ;;  %v1229_v29 = vld [vmem:[#allocation6 + $0xac] ss:$12 sps:$4 sm:$0xff]   ;;  %v1235_v33 = vld [vmem:[#allocation6 + $0xc4] ss:$12 sps:$4 sm:$0xff]   ;;  %v1236_v34 = vld [vmem:[#allocation6 + $0xc8] ss:$12 sps:$4 sm:$0xff]  }
  0x55   :  { %1129 = vmatprep.subr.bf16.mxu0 %v1208_v13  ;;  %v166_v37 = vsub.s32 0, %v1474_v36  ;;  %v1480_v38 = vld [vmem:[%s1573_s3] sm:$0xff]  ;;  %v1233_v54 = vld [vmem:[#allocation6 + $0xc0] ss:$12 sps:$4 sm:$0xff]   ;;  %v1239_v55 = vld [vmem:[#allocation6 + $0xdc] ss:$12 sps:$4 sm:$0xff]  }
  0x56   :  { %407 = vmatpush1.bf16.msra.mxu1 %v1211_v15  ;;  %v1237_v56 = vld [vmem:[#allocation6 + $0xd8] ss:$12 sps:$4 sm:$0xff]   ;;  %v1240_v57 = vld [vmem:[#allocation6 + $0xe0] ss:$12 sps:$4 sm:$0xff]   ;;  %v1241_v59 = vld [vmem:[#allocation6 + $0xf0] ss:$12 sps:$4 sm:$0xff]  }
  0x57   :  { %408 = vmatprep.subr.bf16.mxu1 %v1213_v17  ;;  %v167_v39 = vrot.slane %v1480_v38, %v166_v37  ;;  %v1243_v58 = vld [vmem:[#allocation6 + $0xf4] ss:$12 sps:$4 sm:$0xff]   ;;  %v1244_v60 = vld [vmem:[#allocation6 + $0xf8] ss:$12 sps:$4 sm:$0xff]   ;;  %v1248_v63 = vld [vmem:[#allocation6 + $0x110] ss:$12 sps:$4 sm:$0xff]  }
  0x58   :  { %1130 = vmatpush3.bf16.msra.mxu0 %v1208_v13  ;;  %v1247_v61 = vld [vmem:[#allocation6 + $0x10c] ss:$12 sps:$4 sm:$0xff]   ;;  %v1245_v62 = vld [vmem:[#allocation6 + $0x108] ss:$12 sps:$4 sm:$0xff]   ;;  %v1251_v0 = vld [vmem:[#allocation6 + $0x124] ss:$12 sps:$4 sm:$0xff]  }
  0x59   :  { %1131 = vmatprep.subr.bf16.mxu0 %v1212_v16  ;;  %v1249_v1 = vld [vmem:[#allocation6 + $0x120] ss:$12 sps:$4 sm:$0xff]   ;;  %v1252_v2 = vld [vmem:[#allocation6 + $0x128] ss:$12 sps:$4 sm:$0xff]   ;;  %v1253_v4 = vld [vmem:[#allocation6 + $0x138] ss:$12 sps:$4 sm:$0xff]  }
  0x5a   :  { %409 = vmatpush1.bf16.msra.mxu1 %v1215_v18  ;;  %v1255_v3 = vld [vmem:[#allocation6 + $0x13c] ss:$12 sps:$4 sm:$0xff]   ;;  %v1256_v5 = vld [vmem:[#allocation6 + $0x140] ss:$12 sps:$4 sm:$0xff]   ;;  %v1260_v8 = vld [vmem:[#allocation6 + $0x158] ss:$12 sps:$4 sm:$0xff]  }
  0x5b   :  { %410 = vmatprep.subr.bf16.mxu1 %v1217_v20  ;;  %v1259_v6 = vld [vmem:[#allocation6 + $0x154] ss:$12 sps:$4 sm:$0xff]   ;;  %v1257_v7 = vld [vmem:[#allocation6 + $0x150] ss:$12 sps:$4 sm:$0xff]   ;;  %v1263_v10 = vld [vmem:[#allocation6 + $0x16c] ss:$12 sps:$4 sm:$0xff]  }
  0x5c   :  { %1132 = vmatpush3.bf16.msra.mxu0 %v1212_v16  ;;  %v1261_v9 = vld [vmem:[#allocation6 + $0x168] ss:$12 sps:$4 sm:$0xff]   ;;  %v1264_v11 = vld [vmem:[#allocation6 + $0x170] ss:$12 sps:$4 sm:$0xff]   ;;  %v1485_v12 = vld [vmem:[#allocation7] sm:$0xff]   ;;  %v78_v13 = vadd.s32 8, %v1474_v36 }
  0x5d   :  { %1133 = vmatprep.subr.bf16.mxu0 %v1216_v19  ;;  %v79_v15 = vadd.s32 16, %v1474_v36  ;;  %v80_v16 = vadd.s32 24, %v1474_v36  ;;  %vm508_vm1 = vcmp.lt.s32.totalorder %v1474_v36, 1  ;;  %vm521_vm3 = vcmp.lt.s32.totalorder %v1474_v36, 7 }
  0x5e   :  { %411 = vmatpush1.bf16.msra.mxu1 %v1219_v21  ;;  %v92_v14 = vand.u32 15, %v78_v13  ;;  %v1386_v35 = vmov 0.0  }
  0x5f   :  { %412 = vmatprep.subr.bf16.mxu1 %v1221_v23  ;;  %v106_v23 = vand.u32 15, %v80_v16 }
  0x60   :  { %1134 = vmatpush3.bf16.msra.mxu0 %v1216_v19  ;;  %vm142_vm2 = vcmp.ne.s32.totalorder %v92_v14, 15 }
  0x61   :  { %1135 = vmatprep.subr.bf16.mxu0 %v1220_v22  ;;  %v1496_v37 = vsel %vm142_vm2, 1.0, %v1386_v35  ;;  %vm144_vm5 = vcmp.ne.s32.totalorder %v106_v23, 15 }
  0x62   :  { %413 = vmatpush1.bf16.msra.mxu1 %v1223_v24 }
  0x63   :  { %414 = vmatprep.subr.bf16.mxu1 %v1225_v26 }
  0x64   :  { %1136 = vmatpush3.bf16.msra.mxu0 %v1220_v22  ;;  %v99_v22 = vand.u32 15, %v79_v15 }
  0x65   :  { %1137 = vmatprep.subr.bf16.mxu0 %v1224_v25 }
  0x66   :  { %415 = vmatpush1.bf16.msra.mxu1 %v1227_v28  ;;  %vm131_vm4 = vcmp.ne.s32.totalorder %v99_v22, 0 }
  0x67   :  { %416 = vmatprep.subr.bf16.mxu1 %v1229_v29 }
  0x68   :  { %1138 = vmatpush3.bf16.msra.mxu0 %v1224_v25 }
  0x69   :  { %1139 = vmatprep.subr.bf16.mxu0 %v1228_v27 }
  0x6a   :  { %417 = vmatpush1.bf16.msra.mxu1 %v1231_v32 }
  0x6b   :  { %729 = vmatprep.subr.bf16.mxu1 %v1235_v33  ;;  %v85_v33 = vand.u32 15, %v1474_v36 }
  0x6c   :  { %1140 = vmatpush3.bf16.msra.mxu0 %v1228_v27 }
  0x6d   :  { %1141 = vmatprep.subr.bf16.mxu0 %v1232_v30  ;;  %vm129_vm6 = vcmp.ne.s32.totalorder %v85_v33, 0  ;;  %v1269_v33 = vld [vmem:[#allocation7 + $0x20] sm:$0xff]  }
  0x70   :  { %1142 = vmatpush3.bf16.msra.mxu0 %v1232_v30 }
  0x71   :  { %1147 = vmatprep.subr.bf16.mxu0 %v1236_v34 }
 0x126   :  { %v1125_v40 = vpop.f32.mrb[0].mxu0 }
 0x127   :  { %v230_v41 = vadd.f32 %v1125_v40, %v167_v39  ;;  %v221_v42 = vpop.f32.mrb[1].mxu0  ;;  %v540_v40 = vsub.s32 1, %v1474_v36 }
 0x128   :  { %v222_v43 = vadd.f32 %v221_v42, %v167_v39  ;;  %v1126_v44 = vpop.f32.mrb[2].mxu0 }
 0x129   :  { %1273 = vtanh.f32 %v230_v41  ;;  %v233_v45 = vadd.f32 %v1126_v44, %v167_v39  ;;  %v224_v46 = vpop.f32.mrb[3].mxu0 }
 0x12a   :  { %1275 = vtanh.f32 %v222_v43  ;;  %v225_v47 = vadd.f32 %v224_v46, %v167_v39 }
 0x12b   :  { %1277 = vtanh.f32 %v233_v45 }
 0x12c   :  { %1279 = vtanh.f32 %v225_v47 }
 0x133   :  { %v1274_v48 = vpop.eup %1273 }
 0x134   :  { %v1276_v49 = vpop.eup %1275 }
 0x135   :  { %v1278_v50 = vpop.eup %1277 }
 0x136   :  { %v1280_v51 = vpop.eup %1279  ;;  %v241_v52 = vpack.c.bf16 %v1278_v50, %v1274_v48 }
 0x137   :  { %v240_v53 = vpack.c.bf16 %v1280_v51, %v1276_v49  ;;  %v1508_v49 = vsel %vm131_vm4, 1.0, %v1386_v35 }
 0x139   :  { %435 = vmatmul.mubr.bf16.vlgmr.msra.gmra.mrb[0].mxu1 %v240_v53  ;;  %1143 = vmatprep.mubr.bf16.mxu0 %v240_v53 }
 0x13a   :  { %1144 = vmatmul.mubr.bf16.vlgmr.msra.gmra.mrb[4].mxu0 %v241_v52  ;;  %444 = vmatprep.mubr.bf16.mxu1 %v1385_v31 }
 0x13b   :  { %730 = vmatpush1.bf16.msra.mxu1 %v1233_v54  ;;  %1148 = vmatpush3.bf16.msra.mxu0 %v1236_v34  ;;  %v1511_v54 = vsel %vm144_vm5, 1.0, %v1386_v35 }
 0x13c   :  { %731 = vmatprep.subr.bf16.mxu1 %v1239_v55  ;;  %1149 = vmatprep.subr.bf16.mxu0 %v1240_v57 }
 0x13f   :  { %732 = vmatpush1.bf16.msra.mxu1 %v1237_v56  ;;  %1150 = vmatpush3.bf16.msra.mxu0 %v1240_v57  ;;  %v1515_v56 = vsel %vm129_vm6, 1.0, %v1386_v35  ;;  %v1271_v35 = vld [vmem:[#allocation7 + $0x30] sm:$0xff]  }
 0x140   :  { %733 = vmatprep.subr.bf16.mxu1 %v1243_v58  ;;  %1151 = vmatprep.subr.bf16.mxu0 %v1244_v60 }
 0x141   :  { %445 = vmatmul.mubr.bf16.gmra.mrb[4].mxu1 %v241_v52  ;;  %v541_v52 = vrot.slane %v1480_v38, %v540_v40 }
 0x142   :  { %761 = vmatprep.mubr.bf16.mxu1 %v1385_v31 }
 0x143   :  { %734 = vmatpush1.bf16.msra.mxu1 %v1241_v59  ;;  %1152 = vmatpush3.bf16.msra.mxu0 %v1244_v60  ;;  %v552_v60 = vsub.s32 3, %v1474_v36 }
 0x144   :  { %735 = vmatprep.subr.bf16.mxu1 %v1247_v61  ;;  %1153 = vmatprep.subr.bf16.mxu0 %v1248_v63 }
 0x147   :  { %736 = vmatpush1.bf16.msra.mxu1 %v1245_v62  ;;  %1154 = vmatpush3.bf16.msra.mxu0 %v1248_v63 }
 0x148   :  { %737 = vmatprep.subr.bf16.mxu1 %v1251_v0  ;;  %1155 = vmatprep.subr.bf16.mxu0 %v1252_v2 }
 0x14b   :  { %738 = vmatpush1.bf16.msra.mxu1 %v1249_v1  ;;  %1156 = vmatpush3.bf16.msra.mxu0 %v1252_v2 }
 0x14c   :  { %739 = vmatprep.subr.bf16.mxu1 %v1255_v3  ;;  %1157 = vmatprep.subr.bf16.mxu0 %v1256_v5 }
 0x14f   :  { %740 = vmatpush1.bf16.msra.mxu1 %v1253_v4  ;;  %1158 = vmatpush3.bf16.msra.mxu0 %v1256_v5 }
 0x150   :  { %741 = vmatprep.subr.bf16.mxu1 %v1259_v6  ;;  %1159 = vmatprep.subr.bf16.mxu0 %v1260_v8 }
 0x153   :  { %742 = vmatpush1.bf16.msra.mxu1 %v1257_v7  ;;  %1160 = vmatpush3.bf16.msra.mxu0 %v1260_v8  ;;  %v553_v7 = vrot.slane %v1480_v38, %v552_v60  ;;  %v560_v8 = vsub.s32 5, %v1474_v36 }
 0x154   :  { %743 = vmatprep.subr.bf16.mxu1 %v1263_v10  ;;  %1161 = vmatprep.subr.bf16.mxu0 %v1264_v11 }
 0x157   :  { %744 = vmatpush1.bf16.msra.mxu1 %v1261_v9  ;;  %1162 = vmatpush3.bf16.msra.mxu0 %v1264_v11 }
 0x158   :  { %1167 = vmatprep.subr.bf16.mxu1 %v1485_v12 }
 0x20c   :  { %v436_v17 = vpop.f32.mrb[0].mxu1 }
 0x20d   :  { %v438_v18 = vpop.f32.mrb[1].mxu1  ;;  %v1145_v19 = vpop.f32.mrb[4].mxu0  ;;  %v504_v24 = vrot.slane %v436_v17, 7  ;;  %v561_v17 = vrot.slane %v1480_v38, %v560_v8 }
 0x20e   :  { %v440_v20 = vpop.f32.mrb[2].mxu1  ;;  %v489_v21 = vpop.f32.mrb[5].mxu0  ;;  %v519_v29 = vrot.slane %v1145_v19, 1 }
 0x20f   :  { %v505_v25 = vrot.slane %v440_v20, 7  ;;  %v517_v26 = vrot.slane %v489_v21, 1  ;;  %v442_v27 = vpop.f32.mrb[3].mxu1  ;;  %v1146_v28 = vpop.f32.mrb[6].mxu0 }
 0x210   :  { %v520_v30 = vrot.slane %v1146_v28, 1  ;;  %v492_v32 = vpop.f32.mrb[7].mxu0 }
 0x211   :  { %v511_v34 = vsel %vm508_vm1, %v504_v24, %v505_v25  ;;  %v518_v39 = vrot.slane %v492_v32, 1  ;;  %v1268_v32 = vld [vmem:[#allocation7 + $0x18] sm:$0xff]  }
 0x212   :  { %v531_v41 = vadd.f32 %v511_v34, %v442_v27  ;;  %v525_v42 = vsel %vm521_vm3, %v520_v30, %v517_v26  ;;  %v522_v43 = vsel %vm521_vm3, %v519_v29, %v520_v30  ;;  %v1267_v30 = vld [vmem:[#allocation7 + $0x10] sm:$0xff]   ;;  %v1270_v34 = vld [vmem:[#allocation7 + $0x28] sm:$0xff]  }
 0x213   :  { %v523_v44 = vsel %vm521_vm3, %v518_v39, %v519_v29  ;;  %v524_v45 = vsel %vm521_vm3, %v517_v26, %v518_v39  ;;  %v529_v63 = vmul.f32 %v1511_v54, %v525_v42  ;;  %v1266_v29 = vld [vmem:[#allocation7 + $0x8] sm:$0xff]  }
 0x214   :  { %v527_v46 = vmul.f32 %v1496_v37, %v523_v44  ;;  %v446_v47 = vpop.f32.mrb[4].mxu1 }
 0x215   :  { %v506_v48 = vrot.slane %v446_v47, 7  ;;  %v448_v50 = vpop.f32.mrb[5].mxu1 }
 0x216   :  { %v535_v51 = vadd.f32 %v531_v41, %v527_v46  ;;  %v450_v53 = vpop.f32.mrb[6].mxu1 }
 0x217   :  { %v510_v55 = vsel %vm508_vm1, %v505_v25, %v506_v48  ;;  %v507_v57 = vrot.slane %v450_v53, 7  ;;  %v452_v58 = vpop.f32.mrb[7].mxu1 }
 0x218   :  { %v515_v59 = vmul.f32 %v1508_v49, %v510_v55  ;;  %v543_v0 = vadd.f32 %v541_v52, %v535_v51 }
 0x219   :  { %v512_v61 = vsel %vm508_vm1, %v507_v57, %v504_v24  ;;  %v509_v62 = vsel %vm508_vm1, %v506_v48, %v507_v57 }
 0x21a   :  { %v532_v1 = vadd.f32 %v515_v59, %v448_v50  ;;  %v513_v2 = vmul.f32 %v1515_v56, %v512_v61  ;;  %v533_v3 = vadd.f32 %v509_v62, %v452_v58  ;;  %v547_v9 = vmax.f32 %v543_v0, 0.0 }
 0x21b   :  { %v865_v58 = vsub.s32 2, %v1474_v36 }
 0x21c   :  { %v536_v4 = vadd.f32 %v532_v1, %v522_v43  ;;  %v530_v5 = vadd.f32 %v513_v2, %v438_v18  ;;  %v537_v6 = vadd.f32 %v533_v3, %v529_v63  ;;  %v555_v19 = vmul.f32 %v553_v7, %v547_v9 }
 0x21d   :  { %v866_v3 = vrot.slane %v1480_v38, %v865_v58  ;;  %v877_v9 = vsub.s32 4, %v1474_v36 }
 0x21e   :  { %v544_v10 = vadd.f32 %v541_v52, %v536_v4  ;;  %v534_v11 = vadd.f32 %v530_v5, %v524_v45  ;;  %v545_v13 = vadd.f32 %v541_v52, %v537_v6  ;;  %v563_v26 = vadd.f32 %v561_v17, %v555_v19 }
 0x220   :  { %v548_v14 = vmax.f32 %v544_v10, 0.0  ;;  %v542_v15 = vadd.f32 %v541_v52, %v534_v11  ;;  %v549_v16 = vmax.f32 %v545_v13, 0.0 }
 0x222   :  { %v556_v20 = vmul.f32 %v553_v7, %v548_v14  ;;  %v546_v21 = vmax.f32 %v542_v15, 0.0  ;;  %v557_v22 = vmul.f32 %v553_v7, %v549_v16 }
 0x224   :  { %v564_v23 = vadd.f32 %v561_v17, %v556_v20  ;;  %v554_v18 = vmul.f32 %v553_v7, %v546_v21  ;;  %v565_v24 = vadd.f32 %v561_v17, %v557_v22  ;;  %v885_v21 = vsub.s32 6, %v1474_v36 }
 0x226   :  { %v562_v25 = vadd.f32 %v561_v17, %v554_v18  ;;  %v567_v27 = vpack.c.bf16 %v565_v24, %v564_v23 }
 0x228   :  { %v566_v28 = vpack.c.bf16 %v563_v26, %v562_v25 }
 0x22a   :  { %762 = vmatmul.mubr.bf16.vlgmr.msra.gmra.mrb[8].mxu1 %v566_v28  ;;  %1163 = vmatprep.mubr.bf16.mxu0 %v566_v28 }
 0x22b   :  { %1164 = vmatmul.mubr.bf16.vlgmr.msra.gmra.mrb[8].mxu0 %v567_v27  ;;  %771 = vmatprep.mubr.bf16.mxu1 %v1385_v31  ;;  %v1272_v31 = vld [vmem:[#allocation7 + $0x38] sm:$0xff]  }
 0x22c   :  { %1168 = vmatpush3.bf16.msra.mxu1 %v1485_v12 }
 0x22d   :  { %1169 = vmatprep.subr.bf16.mxu1 %v1266_v29 }
 0x230   :  { %1170 = vmatpush3.bf16.msra.mxu1 %v1266_v29 }
 0x231   :  { %1171 = vmatprep.subr.bf16.mxu1 %v1267_v30 }
 0x232   :  { %772 = vmatmul.mubr.bf16.gmra.mrb[12].mxu1 %v567_v27 }
 0x234   :  { %1172 = vmatpush3.bf16.msra.mxu1 %v1267_v30 }
 0x235   :  { %1173 = vmatprep.subr.bf16.mxu1 %v1268_v32 }
 0x238   :  { %1174 = vmatpush3.bf16.msra.mxu1 %v1268_v32 }
 0x239   :  { %1175 = vmatprep.subr.bf16.mxu1 %v1269_v33 }
 0x23c   :  { %1176 = vmatpush3.bf16.msra.mxu1 %v1269_v33 }
 0x23d   :  { %1177 = vmatprep.subr.bf16.mxu1 %v1270_v34 }
 0x240   :  { %1178 = vmatpush3.bf16.msra.mxu1 %v1270_v34 }
 0x241   :  { %1179 = vmatprep.subr.bf16.mxu1 %v1271_v35 }
 0x244   :  { %1180 = vmatpush3.bf16.msra.mxu1 %v1271_v35 }
 0x245   :  { %1181 = vmatprep.subr.bf16.mxu1 %v1272_v31 }
 0x248   :  { %1182 = vmatpush3.bf16.msra.mxu1 %v1272_v31 }
 0x2fd   :  { %v763_v12 = vpop.f32.mrb[8].mxu1 }
 0x2fe   :  { %v765_v39 = vpop.f32.mrb[9].mxu1  ;;  %v1165_v40 = vpop.f32.mrb[8].mxu0  ;;  %v831_v43 = vrot.slane %v763_v12, 7 }
 0x2ff   :  { %v767_v41 = vpop.f32.mrb[10].mxu1  ;;  %v816_v42 = vpop.f32.mrb[9].mxu0  ;;  %v845_v48 = vrot.slane %v1165_v40, 1  ;;  %v911_v40 = vsub.s32 7, %v1474_v36 }
 0x300   :  { %v832_v44 = vrot.slane %v767_v41, 7  ;;  %v843_v45 = vrot.slane %v816_v42, 1  ;;  %v769_v46 = vpop.f32.mrb[11].mxu1  ;;  %v1166_v47 = vpop.f32.mrb[10].mxu0 }
 0x301   :  { %v846_v50 = vrot.slane %v1166_v47, 1  ;;  %v819_v51 = vpop.f32.mrb[11].mxu0  ;;  %v912_v41 = vrot.slane %v1480_v38, %v911_v40 }
 0x302   :  { %v837_v52 = vsel %vm508_vm1, %v831_v43, %v832_v44  ;;  %v844_v53 = vrot.slane %v819_v51, 1 }
 0x303   :  { %v856_v55 = vadd.f32 %v837_v52, %v769_v46  ;;  %v850_v57 = vsel %vm521_vm3, %v846_v50, %v843_v45  ;;  %v847_v59 = vsel %vm521_vm3, %v845_v48, %v846_v50 }
 0x304   :  { %v848_v60 = vsel %vm521_vm3, %v844_v53, %v845_v48  ;;  %v849_v61 = vsel %vm521_vm3, %v843_v45, %v844_v53  ;;  %v854_v11 = vmul.f32 %v1511_v54, %v850_v57  ;;  %v886_v54 = vrot.slane %v1480_v38, %v885_v21 }
 0x305   :  { %v852_v62 = vmul.f32 %v1496_v37, %v848_v60  ;;  %v773_v63 = vpop.f32.mrb[12].mxu1 }
 0x306   :  { %v833_v0 = vrot.slane %v773_v63, 7  ;;  %v775_v1 = vpop.f32.mrb[13].mxu1 }
 0x307   :  { %v860_v2 = vadd.f32 %v856_v55, %v852_v62  ;;  %v777_v4 = vpop.f32.mrb[14].mxu1 }
 0x308   :  { %v836_v5 = vsel %vm508_vm1, %v832_v44, %v833_v0  ;;  %v834_v6 = vrot.slane %v777_v4, 7  ;;  %v779_v7 = vpop.f32.mrb[15].mxu1 }
 0x309   :  { %v841_v8 = vmul.f32 %v1508_v49, %v836_v5  ;;  %v868_v13 = vadd.f32 %v866_v3, %v860_v2  ;;  %v878_v49 = vrot.slane %v1480_v38, %v877_v9 }
 0x30a   :  { %v838_v10 = vsel %vm508_vm1, %v834_v6, %v831_v43  ;;  %v835_v37 = vsel %vm508_vm1, %v833_v0, %v834_v6 }
 0x30b   :  { %v857_v14 = vadd.f32 %v841_v8, %v775_v1  ;;  %v839_v15 = vmul.f32 %v1515_v56, %v838_v10  ;;  %v858_v16 = vadd.f32 %v835_v37, %v779_v7  ;;  %v872_v22 = vmax.f32 %v868_v13, 0.0 }
 0x30d   :  { %v861_v17 = vadd.f32 %v857_v14, %v847_v59  ;;  %v855_v19 = vadd.f32 %v839_v15, %v765_v39  ;;  %v862_v20 = vadd.f32 %v858_v16, %v854_v11  ;;  %v880_v30 = vmul.f32 %v878_v49, %v872_v22 }
 0x30f   :  { %v869_v23 = vadd.f32 %v866_v3, %v861_v17  ;;  %v859_v18 = vadd.f32 %v855_v19, %v849_v61  ;;  %v870_v24 = vadd.f32 %v866_v3, %v862_v20  ;;  %v888_v12 = vadd.f32 %v886_v54, %v880_v30 }
 0x311   :  { %v873_v25 = vmax.f32 %v869_v23, 0.0  ;;  %v874_v26 = vmax.f32 %v870_v24, 0.0  ;;  %v867_v27 = vadd.f32 %v866_v3, %v859_v18 }
 0x313   :  { %v881_v28 = vmul.f32 %v878_v49, %v873_v25  ;;  %v882_v29 = vmul.f32 %v878_v49, %v874_v26  ;;  %v871_v56 = vmax.f32 %v867_v27, 0.0 }
 0x315   :  { %v889_v32 = vadd.f32 %v886_v54, %v881_v28  ;;  %v890_v33 = vadd.f32 %v886_v54, %v882_v29  ;;  %v879_v34 = vmul.f32 %v878_v49, %v871_v56 }
 0x317   :  { %v892_v35 = vpack.c.bf16 %v890_v33, %v889_v32  ;;  %v887_v31 = vadd.f32 %v886_v54, %v879_v34 }
 0x319   :  { %v891_v39 = vpack.c.bf16 %v888_v12, %v887_v31 }
 0x31b   :  { %1183 = vmatprep.mubr.bf16.mxu1 %v891_v39 }
 0x31c   :  { %1184 = vmatmul.mubr.bf16.vlgmr.msra.gmra.mrb[16].mxu1 %v892_v35 }
 0x3ef   :  { %v1185_v42 = vpop.f32.mrb[16].mxu1 }
 0x3f0   :  { %v1004_v43 = vadd.f32 %v1185_v42, %v912_v41  ;;  %v995_v44 = vpop.f32.mrb[17].mxu1 }
 0x3f1   :  { %v996_v45 = vadd.f32 %v995_v44, %v912_v41  ;;  %v1186_v46 = vpop.f32.mrb[18].mxu1 }
 0x3f2   :  { %1012 = vst [vmem:[%s1575_s5 + $0x10] sm:$0xff] %v1004_v43  ;;  %v1007_v47 = vadd.f32 %v1186_v46, %v912_v41  ;;  %v998_v48 = vpop.f32.mrb[19].mxu1 }
 0x3f3   :  { %1010 = vst [vmem:[%s1575_s5] sm:$0xff] %v996_v45  ;;  %v999_v50 = vadd.f32 %v998_v48, %v912_v41 }
 0x3f4   :  { %1013 = vst [vmem:[%s1575_s5 + $0x18] sm:$0xff] %v1007_v47 }
 0x3f5   :  { %1011 = vst [vmem:[%s1575_s5 + $0x8] sm:$0xff] %v999_v50 }
 0x3f6   :  { %1018 = vsyncpa [#allocation3], 1 }
 0x3f7   :  { %1019 = vsyncpa [#allocation5], 1 }
 0x3f8   :  { %1020 = vsyncpa [#allocation8], 1 }

</bundles_post_ra>
